<compile_context>
chip_gen: v5e
topology: v5e:2x2
jax: 0.10.0
libtpu: 0.0.40
codegen_flags: <defaults>
</compile_context>

<pallas_src>
import jax
import jax.numpy as jnp
from jax.experimental import pallas as pl
from jax.experimental.pallas import tpu as pltpu


def _property_encoder_kernel(x_ref, w1_ref, b1_ref, w2_ref, b2_ref, o_ref):
    # x_ref: (TM, P)   w1_ref: (P, D)   b1_ref: (1, D)
    # w2_ref: (D, D)   b2_ref: (1, D)   o_ref: (TM, D)
    h = jnp.dot(x_ref[...], w1_ref[...], preferred_element_type=jnp.float32)
    h = h + b1_ref[...]
    h = h.astype(w2_ref.dtype)
    y = jnp.dot(h, w2_ref[...], preferred_element_type=jnp.float32)
    y = y + b2_ref[...]
    o_ref[...] = y.astype(o_ref.dtype)


def property_encoder_forward(x, w1, b1, w2, b2, *, row_tile: int = 512):
    """x: (..., n_properties). w1: (P, D), b1: (D,), w2: (D, D), b2: (D,).

    Weights are stored (in, out) so the kernel computes x @ W directly; this is
    mathematically identical to torch's x @ W_pt.T + b (W_pt is (out, in)).
    """
    orig_shape = x.shape
    P = orig_shape[-1]
    D = w1.shape[1]

    # Flatten all leading dims into one row axis (Linear acts on the last dim).
    x2d = x.reshape(-1, P)
    M = x2d.shape[0]

    if M <= row_tile:
        # Small problem: one grid step, full-array blocks (no per-step overhead,
        # no (8,128) divisibility concerns since blocks equal full dims).
        tm = M
        m_pad = M
    else:
        # Large problem: tile rows; pad to a multiple of the tile so every block
        # is full-size (padded rows are sliced off after the call).
        tm = row_tile
        m_pad = pl.cdiv(M, tm) * tm
        if m_pad != M:
            x2d = jnp.pad(x2d, ((0, m_pad - M), (0, 0)))

    b1r = b1.reshape(1, D)
    b2r = b2.reshape(1, D)

    out = pl.pallas_call(
        _property_encoder_kernel,
        out_shape=jax.ShapeDtypeStruct((m_pad, D), x.dtype),
        grid_spec=pl.GridSpec(
            grid=(m_pad // tm,),
            in_specs=[
                pl.BlockSpec((tm, P), lambda i: (i, 0)),   # x rows (tiled)
                pl.BlockSpec((P, D), lambda i: (0, 0)),    # W1 (constant -> resident)
                pl.BlockSpec((1, D), lambda i: (0, 0)),    # b1
                pl.BlockSpec((D, D), lambda i: (0, 0)),    # W2 (constant -> resident)
                pl.BlockSpec((1, D), lambda i: (0, 0)),    # b2
            ],
            out_specs=pl.BlockSpec((tm, D), lambda i: (i, 0)),
        ),
        compiler_params=pltpu.CompilerParams(
            # Row tiles are independent: shard across TensorCores on v7x.
            dimension_semantics=("parallel",),
        ),
    )(x2d, w1, b1r, w2, b2r)

    out = out[:M]
    return out.reshape(*orig_shape[:-1], D)


if __name__ == "__main__":
    # Small shapes consistent with the module: batch=2, n_properties=8, d_model=32.
    B, N_PROPERTIES, D_MODEL = 2, 8, 32

    key = jax.random.PRNGKey(0)
    kx, k1, k2, k3, k4 = jax.random.split(key, 5)
    x = jax.random.normal(kx, (B, N_PROPERTIES), dtype=jnp.float32)
    w1 = jax.random.normal(k1, (N_PROPERTIES, D_MODEL), dtype=jnp.float32) * 0.1
    b1 = jax.random.normal(k2, (D_MODEL,), dtype=jnp.float32) * 0.1
    w2 = jax.random.normal(k3, (D_MODEL, D_MODEL), dtype=jnp.float32) * 0.1
    b2 = jax.random.normal(k4, (D_MODEL,), dtype=jnp.float32) * 0.1

    out = property_encoder_forward(x, w1, b1, w2, b2)
    out = jax.block_until_ready(out)

    # Pure-JAX reference of the PyTorch forward: layer_final(layer(x)).
    ref = (x @ w1 + b1) @ w2 + b2

    assert out.shape == (B, D_MODEL)
    assert out.dtype == x.dtype
    assert jnp.allclose(out, ref, atol=1e-5, rtol=1e-5), "PropertyEncoder forward mismatch"

    print("KERNEL_OK")
</pallas_src>

<mosaic_0001>
module attributes {stable_mosaic.version = 11 : i64} {
  func.func @_property_encoder_kernel(%arg0: i32, %arg1: memref<2x8xf32, #tpu.memory_space<vmem>>, %arg2: memref<8x32xf32, #tpu.memory_space<vmem>>, %arg3: memref<1x32xf32, #tpu.memory_space<vmem>>, %arg4: memref<32x32xf32, #tpu.memory_space<vmem>>, %arg5: memref<1x32xf32, #tpu.memory_space<vmem>>, %arg6: memref<2x32xf32, #tpu.memory_space<vmem>>) attributes {dimension_semantics = [#tpu.dimension_semantics<parallel>], iteration_bounds = array<i64: 1>, scalar_prefetch = 0 : i64, scratch_operands = 0 : i64, tpu.core_type = #tpu.core_type<tc>, window_params = [{transform_indices = @transform_0, window_bounds = array<i64: 2, 8>}, {pipeline_mode = #tpu.pipeline_mode<synchronous>, transform_indices = @transform_1, window_bounds = array<i64: 8, 32>}, {pipeline_mode = #tpu.pipeline_mode<synchronous>, transform_indices = @transform_2, window_bounds = array<i64: 1, 32>}, {pipeline_mode = #tpu.pipeline_mode<synchronous>, transform_indices = @transform_3, window_bounds = array<i64: 32, 32>}, {pipeline_mode = #tpu.pipeline_mode<synchronous>, transform_indices = @transform_4, window_bounds = array<i64: 1, 32>}, {transform_indices = @transform_5, window_bounds = array<i64: 2, 32>}]} {
    %c0 = arith.constant 0 : index
    %c0_0 = arith.constant 0 : index
    %0 = vector.load %arg1[%c0, %c0_0] : memref<2x8xf32, #tpu.memory_space<vmem>>, vector<2x8xf32>
    %c0_1 = arith.constant 0 : index
    %c0_2 = arith.constant 0 : index
    %1 = vector.load %arg2[%c0_1, %c0_2] : memref<8x32xf32, #tpu.memory_space<vmem>>, vector<8x32xf32>
    %cst = arith.constant dense<0.000000e+00> : vector<2x32xf32>
    %2 = tpu.matmul %0, %1, %cst {dimension_numbers = #tpu.dot_dimension_numbers<[1], [0], [0], [1], [0, 0, 1, 1], [], []>} : vector<2x8xf32>, vector<8x32xf32>, vector<2x32xf32> -> vector<2x32xf32>
    %c0_3 = arith.constant 0 : index
    %c0_4 = arith.constant 0 : index
    %3 = vector.load %arg3[%c0_3, %c0_4] : memref<1x32xf32, #tpu.memory_space<vmem>>, vector<1x32xf32>
    %4 = vector.broadcast %3 : vector<1x32xf32> to vector<2x32xf32>
    %5 = arith.addf %2, %4 : vector<2x32xf32>
    %c0_5 = arith.constant 0 : index
    %c0_6 = arith.constant 0 : index
    %6 = vector.load %arg4[%c0_5, %c0_6] : memref<32x32xf32, #tpu.memory_space<vmem>>, vector<32x32xf32>
    %cst_7 = arith.constant dense<0.000000e+00> : vector<2x32xf32>
    %7 = tpu.matmul %5, %6, %cst_7 {dimension_numbers = #tpu.dot_dimension_numbers<[1], [0], [0], [1], [0, 0, 1, 1], [], []>} : vector<2x32xf32>, vector<32x32xf32>, vector<2x32xf32> -> vector<2x32xf32>
    %c0_8 = arith.constant 0 : index
    %c0_9 = arith.constant 0 : index
    %8 = vector.load %arg5[%c0_8, %c0_9] : memref<1x32xf32, #tpu.memory_space<vmem>>, vector<1x32xf32>
    %9 = vector.broadcast %8 : vector<1x32xf32> to vector<2x32xf32>
    %10 = arith.addf %7, %9 : vector<2x32xf32>
    %c0_10 = arith.constant 0 : index
    %c0_11 = arith.constant 0 : index
    %11 = vector.load %arg6[%c0_10, %c0_11] : memref<2x32xf32, #tpu.memory_space<vmem>>, vector<2x32xf32>
    tpu.vector_store %arg6[%c0_10, %c0_11], %10 {strides = array<i32>} : memref<2x32xf32, #tpu.memory_space<vmem>>, vector<2x32xf32>,
    return
  }
  func.func @transform_0(%arg0: i32) -> (i32, i32) {
    %c0_i32 = arith.constant 0 : i32
    %c0_i32_0 = arith.constant 0 : i32
    return %arg0, %c0_i32 : i32, i32
  }
  func.func @transform_1(%arg0: i32) -> (i32, i32) {
    %c0_i32 = arith.constant 0 : i32
    %c0_i32_0 = arith.constant 0 : i32
    %c0_i32_1 = arith.constant 0 : i32
    return %c0_i32, %c0_i32_0 : i32, i32
  }
  func.func @transform_2(%arg0: i32) -> (i32, i32) {
    %c0_i32 = arith.constant 0 : i32
    %c0_i32_0 = arith.constant 0 : i32
    %c0_i32_1 = arith.constant 0 : i32
    return %c0_i32, %c0_i32_0 : i32, i32
  }
  func.func @transform_3(%arg0: i32) -> (i32, i32) {
    %c0_i32 = arith.constant 0 : i32
    %c0_i32_0 = arith.constant 0 : i32
    %c0_i32_1 = arith.constant 0 : i32
    return %c0_i32, %c0_i32_0 : i32, i32
  }
  func.func @transform_4(%arg0: i32) -> (i32, i32) {
    %c0_i32 = arith.constant 0 : i32
    %c0_i32_0 = arith.constant 0 : i32
    %c0_i32_1 = arith.constant 0 : i32
    return %c0_i32, %c0_i32_0 : i32, i32
  }
  func.func @transform_5(%arg0: i32) -> (i32, i32) {
    %c0_i32 = arith.constant 0 : i32
    %c0_i32_0 = arith.constant 0 : i32
    return %arg0, %c0_i32 : i32, i32
  }
}

</mosaic_0001>

<bundles_post_ra>
// kernel: tpu_custom_call.1
= control target key start
LH: loop header
LB: loop body
LE: loop exit
PB: predicated region body
PF: predicated region fallthrough
CT: control target
= control target key end

     0   :  { %10 = vsyncpa [#allocation3], 0  ;;  %s312_s0 = inlined_call_operand.hbm [shape: f32[2,8], index: 0, kind: input, shape index: {}]   ;;  %s313_s1 = inlined_call_operand.hbm [shape: f32[8,32], index: 1, kind: input, shape index: {}]   ;;  %s314_s2 = inlined_call_operand.vmem [shape: f32[1,32], index: 2, kind: input, shape index: {}]   ;;  %s315_s3 = inlined_call_operand.hbm [shape: f32[32,32], index: 3, kind: input, shape index: {}]   ;;  %s316_s4 = inlined_call_operand.vmem [shape: f32[1,32], index: 4, kind: input, shape index: {}]   ;;  %s317_s5 = inlined_call_operand.hbm [shape: f32[2,32], index: 5, kind: output, shape index: {}]  }
   0x1   :  { %11 = vsyncpa [#allocation6], 0  ;;  %s29_s20 = sshll.u32 %s313_s1, 4  ;;  %s30_s20 = int_to_ptr.hbm [resolvable:$true] %s29_s20 }
   0x2   :  { %12 = vsyncpa [#allocation4], 0  ;;  %s258_s21 = smov [#allocation5]   ;;  %s18_s25 = sshll.u32 %s312_s0, 4  ;;  %s19_s25 = int_to_ptr.hbm [resolvable:$true] %s18_s25 }
   0x3   :  { %s31_s22 = sshll.u32 %s258_s21, 4  ;;  %s259_s26 = smov [#allocation2]   ;;  %s32_s22 = int_to_ptr.vmem [resolvable:$true] %s31_s22 }
   0x4   :  { %34 = dma.hbm_to_vmem [thread:$0]  %s30_s20, 128, %s32_s22, [#allocation6]  }
   0x5   :  { %s20_s27 = sshll.u32 %s259_s26, 4  ;;  %s41_s30 = sshll.u32 %s315_s3, 4  ;;  %s21_s27 = int_to_ptr.vmem [resolvable:$true] %s20_s27  ;;  %s42_s30 = int_to_ptr.hbm [resolvable:$true] %s41_s30 }
   0x6   :  { %23 = dma.hbm_to_vmem [thread:$0]  %s19_s25, 32, %s21_s27, [#allocation3]  }
   0x7   :  { %s260_s1 = smov [#allocation7]   ;;  %s261_s7 = smov 128  }
   0x8   :  { %s43_s6 = sshll.u32 %s260_s1, 4  ;;  %s262_s8 = smov 8   ;;  %s44_s6 = int_to_ptr.vmem [resolvable:$true] %s43_s6 }
   0x9   :  { %49 = dma.hbm_to_vmem [thread:$0]  %s42_s30, 512, %s44_s6, [#allocation6], %s261_s7, %s261_s7, %s262_s8  }
   0xa   :  { %252 = dma.done.wait [#allocation3], 32  }
   0xb   :  { %253 = vsyncadd [#allocation3], 4294967264 }
   0xc   :  { %254 = dma.done.wait [#allocation6], 640  }
   0xd   :  { %255 = vsyncadd [#allocation6], 4294966656  ;;  %vm70_vm0 = vcmask 64512   ;;  %v65_v0 = vld [vmem:[#allocation5] sm:$0xff]  ;;  %v64_v1 = vld [vmem:[#allocation2] sm:$0x3] }
   0xe   :  { %v97_v2 = vld [vmem:[#allocation7 + $0x18] sm:$0xff]  ;;  %89 = vmatpush.msra.mxu0 %v65_v0  ;;  %v96_v3 = vld [vmem:[#allocation7 + $0x10] sm:$0xff]  ;;  %v95_v4 = vld [vmem:[#allocation7 + $0x8] sm:$0xff]  ;;  %vm102_vm1 = vcmask 261120   ;;  %s263_s11 = smov [#allocation8]   ;;  %s135_s15 = sshll.u32 %s317_s5, 4  ;;  %s136_s15 = int_to_ptr.hbm [resolvable:$true] %s135_s15 }
   0xf   :  { %118 = vmatpush.msra.mxu1 %v97_v2  ;;  %146 = vmatmul.msk.f32.vlgmr.msra.gmra.mxu0 %vm70_vm0, %v64_v1  ;;  %v94_v5 = vld [vmem:[#allocation7] sm:$0xff]  ;;  %v154_v6 = vld [vmem:[%s314_s2] ss:$0 sm:$0xff]  ;;  %s133_s12 = sshll.u32 %s263_s11, 4  ;;  %vm126_vm2 = vcmask 254976   ;;  %s134_s12 = int_to_ptr.vmem [resolvable:$true] %s133_s12 }
  0x10   :  { %v155_v9 = vld [vmem:[%s316_s4] ss:$0 sm:$0xff] }
  0x11   :  { %119 = vmatpush.msra.mxu1 %v96_v3 }
  0x13   :  { %120 = vmatpush.msra.mxu1 %v95_v4 }
  0x15   :  { %121 = vmatpush.msra.mxu1 %v94_v5 }
  0x8c   :  { %v91_v7 = vpop.f32.mrf.mxu0 }
  0x8d   :  { %v92_v8 = vadd.f32 %v154_v6, %v91_v7 }
  0x8f   :  { %147 = vmatmul.msk.f32.vlgmr.msra.gmra.mxu1 %vm102_vm1, %v92_v8 }
 0x10c   :  { %v123_v10 = vpop.f32.mrf.mxu1 }
 0x10d   :  { %v124_v11 = vadd.f32 %v155_v9, %v123_v10 }
 0x10f   :  { %127 = vst.msk [vmem:[#allocation8] sm:$0x3] %vm126_vm2, %v124_v11 }
 0x110   :  { %138 = dma.vmem_to_hbm [thread:$0]  %s134_s12, 32, %s136_s15, [#allocation4]  }
 0x111   :  { %256 = dma.done.wait [#allocation4], 32  }
 0x112   :  { %257 = vsyncadd [#allocation4], 4294967264 }
 0x113   :  { %143 = vsyncpa [#allocation3], 1 }
 0x114   :  { %144 = vsyncpa [#allocation6], 1 }
 0x115   :  { %145 = vsyncpa [#allocation4], 1 }

</bundles_post_ra>
